<compile_context>
chip_gen: v5e
topology: v5e:2x2
jax: 0.10.0
libtpu: 0.0.40
codegen_flags: <defaults>
</compile_context>

<pallas_src>
import math

import jax
import jax.numpy as jnp
from jax.experimental import pallas as pl
from jax.experimental.pallas import tpu as pltpu


def _torch_pad_to_per_dim(pad, ndim):
    """torch-style pad list (last dim first, [lo, hi, lo, hi, ...]) ->
    per-dim tuple ((lo, hi), ...) of length ndim (leading dims = (0, 0))."""
    assert len(pad) % 2 == 0
    n_padded = len(pad) // 2
    assert n_padded <= ndim
    per_dim = [(0, 0)] * ndim
    for i in range(n_padded):
        per_dim[ndim - 1 - i] = (int(pad[2 * i]), int(pad[2 * i + 1]))
    return tuple(per_dim)


def _cdiv(a, b):
    return -(-a // b)


def _make_pad_kernel(core_pads, out_block_shape, is_bool):
    """Build kernel(val_ref, x_ref, o_ref).

    core_pads: per core-axis (lo, hi) non-negative pads; core axis i lives at
               block axis 1+i (axis 0 is the flattened leading axis L).
    Core axes in the last two block dims -> composed in registers (concat) and
    written with one full-width, lane-dense store. Leading core axes -> halo
    slab stores (full-width over the last two dims) + one interior store.
    """
    k = len(core_pads)
    k_ndim = len(out_block_shape)
    reg = [i for i in range(k) if (1 + i) >= k_ndim - 2]    # lane/sublane axes
    halo = [i for i in range(k) if (1 + i) < k_ndim - 2]    # leading core axes

    def kernel(val_ref, x_ref, o_ref):
        v = val_ref[0]
        if is_bool:
            v = v != 0
        dt = o_ref.dtype

        x = x_ref[...]
        # 1) Compose padding along the last-two-dim core axes in registers.
        for i in reversed(reg):
            lo, hi = core_pads[i]
            if lo == 0 and hi == 0:
                continue
            ax = 1 + i
            parts = []
            if lo:
                shp = list(x.shape)
                shp[ax] = lo
                parts.append(jnp.full(tuple(shp), v, dtype=dt))
            parts.append(x)
            if hi:
                shp = list(x.shape)
                shp[ax] = hi
                parts.append(jnp.full(tuple(shp), v, dtype=dt))
            x = jnp.concatenate(parts, axis=ax)

        if not halo:
            o_ref[...] = x            # single full-width, lane-dense store
            return

        # 2) Halo slabs + one interior store for leading padded core axes.
        def _shape_of(sl):
            shp = []
            for a, s in enumerate(sl):
                start = 0 if s.start is None else s.start
                stop = out_block_shape[a] if s.stop is None else s.stop
                shp.append(stop - start)
            return tuple(shp)

        interior = [slice(None)] * k_ndim
        for idx, i in enumerate(halo):
            ax = 1 + i
            lo, hi = core_pads[i]
            base = [slice(None)] * k_ndim
            for j in halo[:idx]:
                aj = 1 + j
                lj, hj = core_pads[j]
                base[aj] = slice(lj, out_block_shape[aj] - hj)
            if lo:
                sl = list(base)
                sl[ax] = slice(0, lo)
                sl = tuple(sl)
                o_ref[sl] = jnp.full(_shape_of(sl), v, dtype=dt)
            if hi:
                sl = list(base)
                sl[ax] = slice(out_block_shape[ax] - hi, out_block_shape[ax])
                sl = tuple(sl)
                o_ref[sl] = jnp.full(_shape_of(sl), v, dtype=dt)
            interior[ax] = slice(lo, out_block_shape[ax] - hi)

        o_ref[tuple(interior)] = x

    return kernel


def constant_pad_nd(x, pad, value=0.0):
    """Semantics of aten.constant_pad_nd.default(x, pad, value).

    Supports negative padding (cropping), traced fill values, zero-size dims.
    """
    ndim = x.ndim
    per_dim = _torch_pad_to_per_dim(list(pad), ndim)
    out_shape = tuple(s + lo + hi for s, (lo, hi) in zip(x.shape, per_dim))
    dtype = x.dtype

    if any(s < 0 for s in out_shape):
        raise ValueError("constant_pad_nd: negative output dimension")
    if any(s == 0 for s in out_shape):
        return jnp.zeros(out_shape, dtype)

    # ---- 1) Negative pads (crop) via plain XLA slice. ---------------------
    crop = tuple(
        slice(max(0, -lo), s - max(0, -hi))
        for s, (lo, hi) in zip(x.shape, per_dim)
    )
    if any(c != slice(0, s) for c, s in zip(crop, x.shape)):
        x = x[crop]

    pos_pads = tuple((max(0, lo), max(0, hi)) for lo, hi in per_dim)

    # ---- 2) Fast paths. ---------------------------------------------------
    if all(lo == 0 and hi == 0 for lo, hi in pos_pads):
        return x
    if any(s == 0 for s in x.shape):
        # Input cropped to nothing -> output is pure fill.
        return jnp.full(out_shape, jnp.asarray(value), dtype=dtype)

    # ---- 3) Collapse un-padded leading dims -> L, trailing dims -> T. -----
    padded_axes = [i for i, (lo, hi) in enumerate(pos_pads) if lo or hi]
    first, last = padded_axes[0], padded_axes[-1]
    lead = x.shape[:first]
    core_in = tuple(x.shape[first:last + 1])
    trail = x.shape[last + 1:]
    core_pads = pos_pads[first:last + 1]
    core_out = tuple(s + lo + hi for s, (lo, hi) in zip(core_in, core_pads))

    L = int(math.prod(lead)) if lead else 1
    has_T = len(trail) > 0
    T = int(math.prod(trail)) if has_T else 1

    itemsize = jnp.dtype(dtype).itemsize
    pack = max(1, 4 // max(1, itemsize)) * 8       # 8 f32 / 16 bf16 / 32 int8
    core_in_prod = int(math.prod(core_in))
    core_out_prod = int(math.prod(core_out))

    BUDGET = 4 * 1024 * 1024        # per (in + out) block pair (safe on v7x)
    FLOOR = 256 * 1024              # avoid per-step-overhead-dominated blocks
    TARGET_STEPS = 8                # aim for >= 8 pipeline steps
    MIN_STEPS = 4                   # never emit grid=(1,) if avoidable

    # ---- 4a) Trailing (lane) axis tile. ------------------------------------
    if has_T:
        per_lane = (core_in_prod + core_out_prod) * itemsize
        if T > 128 and per_lane * T > BUDGET:
            tt = max(128, (BUDGET // per_lane) // 128 * 128)
            tt = min(tt, T)
        else:
            tt = T
        gT = _cdiv(T, tt)
        row_pair = (core_in_prod + core_out_prod) * tt * itemsize
    else:
        tt = None
        gT = 1
        row_pair = (core_in_prod + core_out_prod) * itemsize

    # ---- 4b) Leading (flattened) axis tile, cdiv-based. --------------------
    budget_rows = max(1, BUDGET // row_pair)
    floor_rows = max(1, FLOOR // row_pair)
    steps_rows = max(1, _cdiv(L, TARGET_STEPS))
    tl = min(budget_rows, max(floor_rows, steps_rows))
    tl = min(tl, max(1, _cdiv(L, min(L, MIN_STEPS))))   # ensure >= MIN_STEPS blocks
    tl = max(1, min(tl, L))

    k_rank = 1 + len(core_in) + (1 if has_T else 0)
    if k_rank == 2:
        # L is the sublane axis of the block: align to the packing factor,
        # or use the full extent if L itself is smaller.
        tl = (tl // pack) * pack
        if tl == 0:
            tl = L if L <= pack else pack
        tl = min(tl, L)

    gL = _cdiv(L, tl)

    # v7x megacore: prefer an even total number of parallel steps.
    if gL * gT > 1 and (gL * gT) % 2 == 1 and gL < L:
        tl_alt = max(1, _cdiv(L, gL + 1))
        ok = (k_rank != 2) or (tl_alt % pack == 0) or (tl_alt == L)
        if ok and tl_alt * row_pair <= max(BUDGET, tl * row_pair):
            gL_alt = _cdiv(L, tl_alt)
            if (gL_alt * gT) % 2 == 0:
                tl, gL = tl_alt, gL_alt

    # Degenerate case: only-last-dim padding of a row that cannot fit in VMEM
    # (lane-tiling a *padded* axis would need per-tile pad logic).
    # TODO(synk): lane-tile the padded last axis with index-dependent pads.
    if tl * row_pair > 12 * 1024 * 1024:
        return jnp.pad(x, pos_pads, mode="constant",
                       constant_values=jnp.asarray(value, dtype=dtype))

    in_k_shape = (L,) + core_in + ((T,) if has_T else ())
    out_k_shape = (L,) + core_out + ((T,) if has_T else ())
    xk = x.reshape(in_k_shape)

    in_block = (tl,) + core_in + ((tt,) if has_T else ())
    out_block = (tl,) + core_out + ((tt,) if has_T else ())
    n_core = len(core_in)

    if has_T and gT > 1:
        grid = (gL, gT)
        x_map = lambda i, j: (i,) + (0,) * n_core + (j,)
        dims = ("parallel", "parallel")
    else:
        grid = (gL,)
        if has_T:
            x_map = lambda i: (i,) + (0,) * n_core + (0,)
        else:
            x_map = lambda i: (i,) + (0,) * n_core
        dims = ("parallel",)

    # Fill value as an SMEM scalar (works for traced values, no captured
    # constants inside the kernel).
    is_bool = dtype == jnp.bool_
    if jnp.issubdtype(dtype, jnp.floating):
        val_arr = jnp.asarray(value, dtype=jnp.float32).reshape((1,))
    else:
        val_arr = jnp.asarray(value, dtype=jnp.int32).reshape((1,))

    kernel = _make_pad_kernel(core_pads, out_block, is_bool)

    in_bytes = int(math.prod(in_k_shape)) * itemsize
    out_bytes = int(math.prod(out_k_shape)) * itemsize

    out = pl.pallas_call(
        kernel,
        out_shape=jax.ShapeDtypeStruct(out_k_shape, dtype),
        grid=grid,
        in_specs=[
            pl.BlockSpec(memory_space=pltpu.MemorySpace.SMEM),
            pl.BlockSpec(in_block, x_map),
        ],
        out_specs=pl.BlockSpec(out_block, x_map),
        compiler_params=pltpu.CompilerParams(
            dimension_semantics=dims,
            vmem_limit_bytes=32 * 1024 * 1024,
        ),
        cost_estimate=pl.CostEstimate(
            flops=0, transcendentals=0, bytes_accessed=in_bytes + out_bytes
        ),
    )(val_arr, xk)

    return out.reshape(out_shape)


def _reference_pad(x, pad, value):
    """Pure-JAX reference (crop + jnp.pad) for correctness checking."""
    per_dim = _torch_pad_to_per_dim(list(pad), x.ndim)
    crop = tuple(
        slice(max(0, -lo), s - max(0, -hi))
        for s, (lo, hi) in zip(x.shape, per_dim)
    )
    xc = x[crop]
    widths = tuple((max(0, lo), max(0, hi)) for lo, hi in per_dim)
    return jnp.pad(xc, widths, mode="constant", constant_values=value)


if __name__ == "__main__":
    key = jax.random.PRNGKey(0)
    # NCHW input, small shapes.
    x = jax.random.normal(key, (2, 4, 16, 16), dtype=jnp.float32)

    # 1) H/W padding (lane + sublane register-composed path).
    out = jax.block_until_ready(constant_pad_nd(x, [1, 1, 2, 2], 0.5))
    ref = _reference_pad(x, [1, 1, 2, 2], 0.5)
    assert out.shape == (2, 4, 20, 18), out.shape
    assert jnp.allclose(out, ref), "mismatch vs reference (positive pad)"

    # 2) Negative pad (crop) mixed with positive pad.
    out2 = jax.block_until_ready(constant_pad_nd(x, [-2, 3, 1, -4], value=-1.0))
    ref2 = _reference_pad(x, [-2, 3, 1, -4], -1.0)
    assert out2.shape == ref2.shape and jnp.allclose(out2, ref2), "mismatch (mixed pad)"

    # 3) Channel-only pad (trailing-dim collapse, sublane compose).
    out3 = jax.block_until_ready(constant_pad_nd(x, [0, 0, 0, 0, 1, 2], value=2.0))
    ref3 = _reference_pad(x, [0, 0, 0, 0, 1, 2], 2.0)
    assert out3.shape == ref3.shape and jnp.allclose(out3, ref3), "mismatch (channel pad)"

    # 4) Pure crop fast path.
    out4 = jax.block_until_ready(constant_pad_nd(x, [-1, -2, -3, 0], value=0.0))
    ref4 = _reference_pad(x, [-1, -2, -3, 0], 0.0)
    assert out4.shape == ref4.shape and jnp.allclose(out4, ref4), "mismatch (pure crop)"

    # 5) Pad W and C simultaneously (exercises the halo-slab + interior path).
    out5 = jax.block_until_ready(constant_pad_nd(x, [1, 1, 0, 0, 1, 2], value=3.0))
    ref5 = _reference_pad(x, [1, 1, 0, 0, 1, 2], 3.0)
    assert out5.shape == ref5.shape and jnp.allclose(out5, ref5), "mismatch (W+C pad)"

    # 6) Traced fill value under jit (SMEM scalar path).
    f = jax.jit(lambda a, v: constant_pad_nd(a, [1, 1, 2, 2], v))
    out6 = jax.block_until_ready(f(x, jnp.float32(0.25)))
    ref6 = _reference_pad(x, [1, 1, 2, 2], 0.25)
    assert out6.shape == ref6.shape and jnp.allclose(out6, ref6), "mismatch (traced value)"

    print("KERNEL_OK")
</pallas_src>

<mosaic_0001>
module attributes {stable_mosaic.version = 11 : i64} {
  func.func @kernel(%arg0: i32, %arg1: memref<1xf32, #tpu.memory_space<smem>>, %arg2: memref<2x16x16xf32, #tpu.memory_space<vmem>>, %arg3: memref<2x20x18xf32, #tpu.memory_space<vmem>>) attributes {dimension_semantics = [#tpu.dimension_semantics<parallel>], iteration_bounds = array<i64: 4>, scalar_prefetch = 0 : i64, scratch_operands = 0 : i64, tpu.core_type = #tpu.core_type<tc>, window_params = [{transform_indices = @transform_0, window_bounds = array<i64: 1>}, {transform_indices = @transform_1, window_bounds = array<i64: 2, 16, 16>}, {transform_indices = @transform_2, window_bounds = array<i64: 2, 20, 18>}]} {
    %c0 = arith.constant 0 : index
    %0 = memref.load %arg1[%c0] : memref<1xf32, #tpu.memory_space<smem>>
    %c0_0 = arith.constant 0 : index
    %c0_1 = arith.constant 0 : index
    %c0_2 = arith.constant 0 : index
    %1 = vector.load %arg2[%c0_0, %c0_1, %c0_2] : memref<2x16x16xf32, #tpu.memory_space<vmem>>, vector<2x16x16xf32>
    %2 = vector.broadcast %0 : f32 to vector<2x16x1xf32>
    %3 = vector.broadcast %0 : f32 to vector<2x16x1xf32>
    %4 = tpu.concatenate %2, %1, %3 in 2 : vector<2x16x1xf32>, vector<2x16x16xf32>, vector<2x16x1xf32> -> vector<2x16x18xf32>
    %5 = vector.broadcast %0 : f32 to vector<2x2x18xf32>
    %6 = vector.broadcast %0 : f32 to vector<2x2x18xf32>
    %7 = tpu.concatenate %5, %4, %6 in 1 : vector<2x2x18xf32>, vector<2x16x18xf32>, vector<2x2x18xf32> -> vector<2x20x18xf32>
    %c0_3 = arith.constant 0 : index
    %c0_4 = arith.constant 0 : index
    %c0_5 = arith.constant 0 : index
    %8 = vector.load %arg3[%c0_3, %c0_4, %c0_5] : memref<2x20x18xf32, #tpu.memory_space<vmem>>, vector<2x20x18xf32>
    tpu.vector_store %arg3[%c0_3, %c0_4, %c0_5], %7 {strides = array<i32>} : memref<2x20x18xf32, #tpu.memory_space<vmem>>, vector<2x20x18xf32>,
    return
  }
  func.func @transform_0(%arg0: i32) -> i32 {
    %c0_i32 = arith.constant 0 : i32
    %c0_i32_0 = arith.constant 0 : i32
    return %c0_i32 : i32
  }
  func.func @transform_1(%arg0: i32) -> (i32, i32, i32) {
    %c0_i32 = arith.constant 0 : i32
    %c0_i32_0 = arith.constant 0 : i32
    %c0_i32_1 = arith.constant 0 : i32
    return %arg0, %c0_i32, %c0_i32_0 : i32, i32, i32
  }
  func.func @transform_2(%arg0: i32) -> (i32, i32, i32) {
    %c0_i32 = arith.constant 0 : i32
    %c0_i32_0 = arith.constant 0 : i32
    %c0_i32_1 = arith.constant 0 : i32
    return %arg0, %c0_i32, %c0_i32_0 : i32, i32, i32
  }
}

</mosaic_0001>

<bundles_post_ra>
// kernel: tpu_custom_call.1
= control target key start
LH: loop header
LB: loop body
LE: loop exit
PB: predicated region body
PF: predicated region fallthrough
CT: control target
= control target key end

     0   :  { %s557_s0 = inlined_call_operand.<no memory space> [shape: f32[1], index: 0, kind: input, shape index: {}]   ;;  %s558_s1 = inlined_call_operand.hbm [shape: f32[8,16,16], index: 1, kind: input, shape index: {}]   ;;  %s559_s2 = inlined_call_operand.vmem [shape: f32[8,20,18], index: 2, kind: output, shape index: {}]  }
   0x1   :  { %7 = sst [smem:[#allocation2]] %s557_s0 }
   0x2   :  { %8 = vsyncpa [#allocation4], 0 }
   0x3   :  { %10 = vsyncpa [#allocation4 + $0x1], 0  ;;  %s448_s11 = smov 0   ;;  %s450_s12 = smov 0  }
   0x4   :  { %s452_s13 = smov 0   ;;  %s454_s14 = smov 0  }
   0x5 LB: > { %s302_s0 = sadd.s32 4294967295, %s425_s14   ;;  %s468_s15 = sadd.s32 1, %s425_s14   ;;  %s425_s14 = sphi %s454_s14, %s566_s14   ;;  %s421_s13 = sphi %s452_s13, %s565_s13   ;;  %s417_s12 = sphi %s450_s12, %s564_s12   ;;  %s413_s11 = sphi %s448_s11, %s563_s11  }
   0x6   : > { %s41_s16 = ssub.s32 %s425_s14, %s468_s15  ;;  %s44_s17 = sadd.s32 1, %s421_s13 }
   0x7   : > { %p42_p0 = scmp.eq.s32.totalorder %s41_s16, 0  ;;  %p51_p1 = scmp.ne.s32.totalorder %s421_s13, %s417_s12 }
   0x8   : > { %p52_p2 = scmp.eq.s32.totalorder %s425_s14, 0  ;;  %p57_p3 = scmp.ne.s32.totalorder %s417_s12, %s413_s11 }
   0x9   : > { %s478_s18 = scalar_select %p42_p0, %s421_s13, %s44_s17  }
   0xa   : > { %p480_p4 = por %p52_p2, %p51_p1  ;;  %p58_p5 = scmp.eq.s32.totalorder %s302_s0, 0 }
   0xb   : > { %p325_p6 = scmp.lt.s32.totalorder %s425_s14, 4  ;;  %s110_s21 = sand.u32 1, %s421_s13  }
   0xc   : > { %p487_p7 = por %p58_p5, %p57_p3  ;;  %s306_s22 = sshll.u32 %s110_s21, 5 }
   0xd   : > { %s317_s23 = sshll.u32 %s425_s14, 5  ;;  %s114_s27 = scalar_lea.vmem [#allocation3], %s306_s22 }
   0xe   : > { %s120_s26 = scalar_lea.hbm %s558_s1, %s317_s23  ;;  %s123_s28 = sshll.u32 %s114_s27, 4  ;;  %s124_s28 = int_to_ptr.vmem [resolvable:$true] %s123_s28 }
   0xf   : > { %s121_s29 = sshll.u32 %s120_s26, 4  ;;  %p498_p8 = pnand %p325_p6, %p480_p4  ;;  %s122_s29 = int_to_ptr.hbm [resolvable:$true] %s121_s29 }
  0x10   : > { %p310_p9 = scmp.ge.s32.totalorder %s425_s14, 1  ;;  %s111_s3 = scalar_lea.sflag [#allocation4], %s110_s21 }
  0x11   : > { %s361_s4 = sshra.s32 %s122_s29, 4  ;;  %p365_p11 = pneg %p498_p8  ;;  %s362_s4 = int_to_ptr.hbm [resolvable:$true] %s361_s4 }
  0x12   : > { %s363_s5 = scalar_lea.hbm %s362_s4, 32  ;;  %s368_s8 = scalar_lea.hbm %s558_s1, 128 }
  0x13   : > { %p364_p10 = scmp.ne.s32.totalorder %s362_s4, %s363_s5  ;;  %p369_p0 = scmp.lt.s32.totalorder %s362_s4, %s558_s1 }
  0x14   : > { %p370_p1 = scmp.lt.s32.totalorder %s368_s8, %s363_s5 }
  0x15   : > { %p366_p12 = pnand %p365_p11, %p364_p10 }
  0x16   : > { %p371_p2 = por %p370_p1, %p369_p0 }
  0x17   : > { %p367_p13 = pneg %p366_p12 }
  0x19   : > { %p372_p3 = pnand %p371_p2, %p367_p13 }
  0x1b   : > { %375 = shalt.err (!%p372_p3)
}
  0x1c   : > { %s427_s11 = smov 128   ;;  %s428_s16 = smov 8  }
  0x1d   : > { %324 = dma.hbm_to_vmem [thread:$0]  (!%p498_p8), %s122_s29, 512, %s124_s28, %s111_s3, %s427_s11, %s427_s11, %s428_s16  }
  0x1e   : > { %p131_p4 = scmp.lt.s32.totalorder %s425_s14, 5 }
  0x20   : > { %p132_p5 = pnand %p310_p9, %p131_p4 }
  0x21   : > { %s137_s17 = sand.u32 (!%p132_p5), 1, %s417_s12  }
  0x22   : > { %135 = sbr.rel (%p132_p5) target bundleno = 173 (0xad), region = 28  ;;  %s311_s19 = sshll.u32 (!%p132_p5), %s137_s17, 5 }
  0x23   : > { %s138_s21 = scalar_lea.sflag (!%p132_p5), [#allocation4], %s137_s17  ;;  %s141_s22 = scalar_lea.vmem (!%p132_p5), [#allocation3], %s311_s19 }
  0x27   : > { %408 = dma.done.wait (%p487_p7), %s138_s21, 512  }
  0x28   : > { %410 = vsyncadd (%p487_p7), %s138_s21, 4294966784  ;;  %v175_v0 = vld [vmem:[%s141_s22 + $0x10] sm:$0xff]  ;;  %v173_v1 = vld [vmem:[%s141_s22] sm:$0xff]  ;;  %s429_s23 = smov 1   ;;  %s312_s24 = sshll.u32 %s302_s0, 1  ;;  %vm194_vm0 = vcmask 7168  }
  0x29   : > { %186 = vrot.lane.b32.xlu1 %v175_v0, %s429_s23  ;;  %182 = vrot.lane.b32.xlu0 %v173_v1, %s429_s23  ;;  %v176_v2 = vld [vmem:[%s141_s22 + $0x18] sm:$0xff]  ;;  %v174_v3 = vld [vmem:[%s141_s22 + $0x8] sm:$0xff]  ;;  %s172_s25 = sld [smem:[#allocation2]]  ;;  %p166_p6 = scmp.lt.s32.totalorder %s312_s24, 7  ;;  %vm199_vm1 = vcmask 138240   ;;  %vm208_vm2 = vcmask 1041408  }
  0x2a   : > { %vm225_vm3 = vcmask 146432   ;;  %vm228_vm4 = vcmask 142336  }
  0x2b   : > { %s568_s24 = smov (!%p166_p6, %s312_s24), 7 }
  0x2c   : > { %s318_s20 = smul.u32 24, %s568_s24 }
  0x2e   : > { %s170_s26 = scalar_lea.vmem %s559_s2, %s318_s20 }
  0x2f   : > { %v177_v4 = vstv %s172_s25 }
  0x31   : > { %188 = vrot.lane.b32.xlu1 %v176_v2, %s429_s23  ;;  %184 = vrot.lane.b32.xlu0 %v174_v3, %s429_s23 }
  0x9b   : > { %v187_v5 = vpop.permute.xlu1 %186  ;;  %v183_v6 = vpop.permute.xlu0 %182 }
  0x9c   : > { %v197_v7 = vsel %vm194_vm0, %v177_v4, %v187_v5  ;;  %v195_v8 = vsel %vm194_vm0, %v177_v4, %v183_v6 }
  0x9d   : > { %v202_v9 = vsel %vm199_vm1, %v197_v7, %v177_v4  ;;  %v200_v10 = vsel %vm199_vm1, %v195_v8, %v177_v4 }
  0x9e   : > { %v212_v11 = vrot.slane %v202_v9, 6  ;;  %v209_v12 = vrot.slane %v200_v10, 6 }
  0xa0   : > { %v222_v13 = vsel %vm208_vm2, %v177_v4, %v212_v11  ;;  %v221_v14 = vsel %vm208_vm2, %v177_v4, %v209_v12 }
  0xa1   : > { %226 = vst.msk [vmem:[%s170_s26] sm:$0xff] %vm225_vm3, %v221_v14 }
  0xa2   : > { %230 = vst.msk [vmem:[%s170_s26 + $0x18] sm:$0xff] %vm225_vm3, %v222_v13 }
  0xa3   : > { %v189_v15 = vpop.permute.xlu1 %188  ;;  %v185_v16 = vpop.permute.xlu0 %184 }
  0xa4   : > { %v198_v17 = vsel %vm194_vm0, %v177_v4, %v189_v15  ;;  %v196_v18 = vsel %vm194_vm0, %v177_v4, %v185_v16 }
  0xa5   : > { %v203_v19 = vsel %vm199_vm1, %v198_v17, %v177_v4  ;;  %v201_v20 = vsel %vm199_vm1, %v196_v18, %v177_v4 }
  0xa6   : > { %v213_v21 = vrot.slane %v203_v19, 6  ;;  %v210_v22 = vrot.slane %v201_v20, 6 }
  0xa8   : > { %v214_v23 = vsel %vm208_vm2, %v212_v11, %v213_v21  ;;  %v211_v24 = vsel %vm208_vm2, %v209_v12, %v210_v22  ;;  %v223_v25 = vsel %vm208_vm2, %v210_v22, %v177_v4  ;;  %v224_v26 = vsel %vm208_vm2, %v213_v21, %v177_v4 }
  0xa9   : > { %227 = vst.msk [vmem:[%s170_s26 + $0x8] sm:$0xff] %vm225_vm3, %v211_v24 }
  0xaa   : > { %229 = vst.msk [vmem:[%s170_s26 + $0x10] sm:$0xf] %vm228_vm4, %v223_v25 }
  0xab   : > { %231 = vst.msk [vmem:[%s170_s26 + $0x20] sm:$0xff] %vm225_vm3, %v214_v23 }
  0xac   : > { %232 = vst.msk [vmem:[%s170_s26 + $0x28] sm:$0xf] %vm228_vm4, %v224_v26 }
  0xad PF: > { %p13_p7 = scmp.ge.s32.totalorder %s468_s15, 6   ;;  %s563_s11 = smov %s417_s12 }
  0xae   : > { %s564_s12 = smov %s421_s13  ;;  %s565_s13 = smov %s478_s18 }
  0xaf   : > { %s566_s14 = smov %s468_s15  ;;  %15 = sbr.rel (!%p13_p7) target bundleno = 5 (0x5), region = 68 }
  0xb4   :  { %257 = vsyncpa [#allocation4], 1 }
  0xb5   :  { %259 = vsyncpa [#allocation4 + $0x1], 1 }

</bundles_post_ra>
